<compile_context>
chip_gen: v6e
topology: v6e:2x2x1
jax: 0.10.0
libtpu: 0.0.40
codegen_flags: <defaults>
</compile_context>

<pallas_src>
import functools

import jax
import jax.numpy as jnp
from jax.experimental import pallas as pl
from jax.experimental.pallas import tpu as pltpu


def _round_up(x, m):
    return (x + m - 1) // m * m


def _conv_bn_relu_kernel(x_ref, w_ref, bias_ref, o_ref, p_ref, *, kh, kw, wp, p_out):
    """Fused conv + BN(eval) + ReLU in the flattened padded domain.

    x_ref:    (Cin, P_in)         bf16  channel-major flattened padded images
    w_ref:    (Cout, kh*kw*Cin)   bf16  BN scale folded in, tap-major columns
    bias_ref: (Cout, 1)           f32   folded BN bias
    o_ref:    (Cout, P_out)       f32   conv output in the flat padded domain
    p_ref:    (kh*kw*Cin, P_out)  bf16  VMEM scratch: implicit-im2col patch matrix
    """
    cin = x_ref.shape[0]
    x = x_ref[...]                                   # (Cin, P_in) bf16, loaded once

    # Implicit im2col: tap (i, j) is just the lane window of x starting at
    # i*wp + j.  Pure lane slices + sublane stores — no reshapes, no per-tap dot.
    for i in range(kh):
        for j in range(kw):
            r = (i * kw + j) * cin
            s = i * wp + j
            p_ref[r:r + cin, :] = x[:, s:s + p_out]

    # Single MXU matmul, f32 accumulation; (Cout, P_out) output keeps lanes dense.
    acc = jnp.dot(w_ref[...], p_ref[...], preferred_element_type=jnp.float32)
    y = acc + bias_ref[...]                          # folded BN bias (f32 epilogue)
    o_ref[...] = jnp.maximum(y, 0.0).astype(o_ref.dtype)


def conv2d_bn_relu(x_nchw, weight_oikk, bn_gamma, bn_beta, bn_mean, bn_var,
                   *, padding=1, stride=1, eps=1e-5):
    """Equivalent of Conv2dReLU(in_c, out_c, k, padding, stride, use_batchnorm=True)
    forward in eval mode.  x_nchw: (N, Cin, H, W) float32."""
    n, cin, h, w = x_nchw.shape
    cout, cin_w, kh, kw = weight_oikk.shape
    assert cin == cin_w

    h_out = (h + 2 * padding - kh) // stride + 1
    w_out = (w + 2 * padding - kw) // stride + 1
    hp, wp = h + 2 * padding, w + 2 * padding
    kk = kh * kw * cin

    # ---- host-side glue: layout + BN folding (tiny tensors, not the hot path) --
    # (N, Cin, H, W) -> zero-pad -> (Cin, N*Hp*Wp) channel-major flat layout.
    x_pad = jnp.pad(x_nchw.astype(jnp.float32),
                    ((0, 0), (0, 0), (padding, padding), (padding, padding)))
    x_flat = jnp.transpose(x_pad, (1, 0, 2, 3)).reshape(cin, n * hp * wp)

    # Flat-domain sizes: every valid output lives at p < p_valid; a tap reads up
    # to p + (kh-1)*wp + (kw-1).  Round both to lane multiples (128).
    p_valid = (n - 1) * hp * wp + (h_out - 1) * stride * wp + (w_out - 1) * stride + 1
    p_out = _round_up(p_valid, 128)
    shift_max = (kh - 1) * wp + (kw - 1)
    p_in = _round_up(max(p_out + shift_max, n * hp * wp), 128)
    x_flat = jnp.pad(x_flat, ((0, 0), (0, p_in - n * hp * wp))).astype(jnp.bfloat16)

    # Fold BN (eval) scale into the weights; keep only a per-channel bias.
    scale = (bn_gamma / jnp.sqrt(bn_var + eps)).astype(jnp.float32)
    bias = (bn_beta - bn_mean * scale).astype(jnp.float32).reshape(cout, 1)
    # (O, I, KH, KW) -> (O, KH, KW, I) -> (O, KH*KW*I): tap-major columns matching
    # the im2col row order (i*kw + j)*cin + c used in the kernel.
    w2 = jnp.transpose(weight_oikk.astype(jnp.float32), (0, 2, 3, 1)).reshape(cout, kk)
    w2 = (w2 * scale[:, None]).astype(jnp.bfloat16)

    kernel = functools.partial(_conv_bn_relu_kernel, kh=kh, kw=kw, wp=wp, p_out=p_out)

    out_flat = pl.pallas_call(
        kernel,
        out_shape=jax.ShapeDtypeStruct((cout, p_out), jnp.float32),
        grid_spec=pltpu.PrefetchScalarGridSpec(
            num_scalar_prefetch=0,
            grid=(1,),
            in_specs=[
                pl.BlockSpec((cin, p_in), lambda b: (0, 0)),
                pl.BlockSpec((cout, kk), lambda b: (0, 0)),
                pl.BlockSpec((cout, 1), lambda b: (0, 0)),
            ],
            out_specs=pl.BlockSpec((cout, p_out), lambda b: (0, 0)),
            scratch_shapes=[pltpu.VMEM((kk, p_out), jnp.bfloat16)],
        ),
        compiler_params=pltpu.CompilerParams(
            dimension_semantics=("arbitrary",)),
    )(x_flat, w2, bias)

    # ---- host-side glue: gather valid flat positions back to NCHW --------------
    total = n * hp * wp
    if p_out >= total:
        out_full = out_flat[:, :total]
    else:
        out_full = jnp.pad(out_flat, ((0, 0), (0, total - p_out)))
    out_full = out_full.reshape(cout, n, hp, wp)
    out_full = out_full[:, :, :(h_out - 1) * stride + 1:stride,
                        :(w_out - 1) * stride + 1:stride]
    return jnp.transpose(out_full, (1, 0, 2, 3))     # (N, Cout, Hout, Wout)


def _reference(x_nchw, weight_oikk, gamma, beta, mean, var, *,
               padding, stride, eps=1e-5, emulate_bf16=False):
    """Pure-JAX reference.  emulate_bf16=True mirrors the kernel's mixed precision
    (bf16 operands, f32 accumulation) for a tight numerical check."""
    scale = gamma / jnp.sqrt(var + eps)
    bias = beta - mean * scale
    xr = x_nchw
    wr = weight_oikk * scale[:, None, None, None]
    if emulate_bf16:
        xr = xr.astype(jnp.bfloat16).astype(jnp.float32)
        wr = wr.astype(jnp.bfloat16).astype(jnp.float32)
    y = jax.lax.conv_general_dilated(
        xr, wr,
        window_strides=(stride, stride),
        padding=((padding, padding), (padding, padding)),
        dimension_numbers=("NCHW", "OIHW", "NCHW"),
        preferred_element_type=jnp.float32)
    y = y + bias[None, :, None, None]
    return jnp.maximum(y, 0.0)


if __name__ == "__main__":
    # Module hyperparameters (consistent with Conv2dReLU(4, 8, 3, padding=1)).
    N, C_IN, H, W = 2, 4, 16, 16
    C_OUT, K, PAD, STRIDE = 8, 3, 1, 1

    key = jax.random.PRNGKey(0)
    kx, kw_, kg, kb, km, kv = jax.random.split(key, 6)

    x = jax.random.normal(kx, (N, C_IN, H, W), dtype=jnp.float32)
    # Conv2d weight (no conv bias since use_batchnorm=True).
    weight = jax.random.normal(kw_, (C_OUT, C_IN, K, K), dtype=jnp.float32) * 0.1
    # Deterministic, non-trivial BatchNorm parameters / running stats.
    gamma = 1.0 + 0.1 * jax.random.normal(kg, (C_OUT,), dtype=jnp.float32)
    beta = 0.1 * jax.random.normal(kb, (C_OUT,), dtype=jnp.float32)
    running_mean = 0.1 * jax.random.normal(km, (C_OUT,), dtype=jnp.float32)
    running_var = 1.0 + 0.1 * jax.random.uniform(kv, (C_OUT,), dtype=jnp.float32)

    out = conv2d_bn_relu(x, weight, gamma, beta, running_mean, running_var,
                         padding=PAD, stride=STRIDE)
    out = jax.block_until_ready(out)
    assert out.shape == (N, C_OUT, H, W), out.shape

    # Tight check against a reference using the same bf16-operand / f32-accumulate
    # precision as the kernel.
    ref_mixed = _reference(x, weight, gamma, beta, running_mean, running_var,
                           padding=PAD, stride=STRIDE, emulate_bf16=True)
    assert jnp.allclose(out, ref_mixed, atol=1e-4, rtol=1e-4), \
        float(jnp.max(jnp.abs(out - ref_mixed)))

    # Loose sanity check against the full-f32 module semantics (bf16 MXU inputs
    # introduce ~1e-3 level differences at these magnitudes).
    ref_f32 = _reference(x, weight, gamma, beta, running_mean, running_var,
                         padding=PAD, stride=STRIDE, emulate_bf16=False)
    assert jnp.allclose(out, ref_f32, atol=1e-1, rtol=1e-1), \
        float(jnp.max(jnp.abs(out - ref_f32)))

    print("KERNEL_OK")
</pallas_src>

<mosaic_0001>
module attributes {stable_mosaic.version = 11 : i64} {
  func.func @_conv_bn_relu_kernel(%arg0: i32, %arg1: memref<4x768xbf16, #tpu.memory_space<vmem>>, %arg2: memref<8x36xbf16, #tpu.memory_space<vmem>>, %arg3: memref<8x1xf32, #tpu.memory_space<vmem>>, %arg4: memref<8x640xf32, #tpu.memory_space<vmem>>, %arg5: memref<36x640xbf16, #tpu.memory_space<vmem>>) attributes {dimension_semantics = [#tpu.dimension_semantics<arbitrary>], iteration_bounds = array<i64: 1>, scalar_prefetch = 0 : i64, scratch_operands = 1 : i64, tpu.core_type = #tpu.core_type<tc>, window_params = [{pipeline_mode = #tpu.pipeline_mode<synchronous>, transform_indices = @transform_0, window_bounds = array<i64: 4, 768>}, {pipeline_mode = #tpu.pipeline_mode<synchronous>, transform_indices = @transform_1, window_bounds = array<i64: 8, 36>}, {pipeline_mode = #tpu.pipeline_mode<synchronous>, transform_indices = @transform_2, window_bounds = array<i64: 8, 1>}, {pipeline_mode = #tpu.pipeline_mode<synchronous>, transform_indices = @transform_3, window_bounds = array<i64: 8, 640>}]} {
    %c0 = arith.constant 0 : index
    %c0_0 = arith.constant 0 : index
    %0 = vector.load %arg1[%c0, %c0_0] : memref<4x768xbf16, #tpu.memory_space<vmem>>, vector<4x768xbf16>
    %1 = vector.extract_strided_slice %0 {offsets = [0, 0], sizes = [4, 640], strides = [1, 1]} : vector<4x768xbf16> to vector<4x640xbf16>
    %c0_1 = arith.constant 0 : index
    %c0_2 = arith.constant 0 : index
    %2 = vector.load %arg5[%c0_1, %c0_2] : memref<36x640xbf16, #tpu.memory_space<vmem>>, vector<4x640xbf16>
    tpu.vector_store %arg5[%c0_1, %c0_2], %1 {strides = array<i32>} : memref<36x640xbf16, #tpu.memory_space<vmem>>, vector<4x640xbf16>,
    %3 = vector.extract_strided_slice %0 {offsets = [0, 1], sizes = [4, 640], strides = [1, 1]} : vector<4x768xbf16> to vector<4x640xbf16>
    %c4 = arith.constant 4 : index
    %c0_3 = arith.constant 0 : index
    %4 = vector.load %arg5[%c4, %c0_3] : memref<36x640xbf16, #tpu.memory_space<vmem>>, vector<4x640xbf16>
    tpu.vector_store %arg5[%c4, %c0_3], %3 {strides = array<i32>} : memref<36x640xbf16, #tpu.memory_space<vmem>>, vector<4x640xbf16>,
    %5 = vector.extract_strided_slice %0 {offsets = [0, 2], sizes = [4, 640], strides = [1, 1]} : vector<4x768xbf16> to vector<4x640xbf16>
    %c8 = arith.constant 8 : index
    %c0_4 = arith.constant 0 : index
    %6 = vector.load %arg5[%c8, %c0_4] : memref<36x640xbf16, #tpu.memory_space<vmem>>, vector<4x640xbf16>
    tpu.vector_store %arg5[%c8, %c0_4], %5 {strides = array<i32>} : memref<36x640xbf16, #tpu.memory_space<vmem>>, vector<4x640xbf16>,
    %7 = vector.extract_strided_slice %0 {offsets = [0, 18], sizes = [4, 640], strides = [1, 1]} : vector<4x768xbf16> to vector<4x640xbf16>
    %c12 = arith.constant 12 : index
    %c0_5 = arith.constant 0 : index
    %8 = vector.load %arg5[%c12, %c0_5] : memref<36x640xbf16, #tpu.memory_space<vmem>>, vector<4x640xbf16>
    tpu.vector_store %arg5[%c12, %c0_5], %7 {strides = array<i32>} : memref<36x640xbf16, #tpu.memory_space<vmem>>, vector<4x640xbf16>,
    %9 = vector.extract_strided_slice %0 {offsets = [0, 19], sizes = [4, 640], strides = [1, 1]} : vector<4x768xbf16> to vector<4x640xbf16>
    %c16 = arith.constant 16 : index
    %c0_6 = arith.constant 0 : index
    %10 = vector.load %arg5[%c16, %c0_6] : memref<36x640xbf16, #tpu.memory_space<vmem>>, vector<4x640xbf16>
    tpu.vector_store %arg5[%c16, %c0_6], %9 {strides = array<i32>} : memref<36x640xbf16, #tpu.memory_space<vmem>>, vector<4x640xbf16>,
    %11 = vector.extract_strided_slice %0 {offsets = [0, 20], sizes = [4, 640], strides = [1, 1]} : vector<4x768xbf16> to vector<4x640xbf16>
    %c20 = arith.constant 20 : index
    %c0_7 = arith.constant 0 : index
    %12 = vector.load %arg5[%c20, %c0_7] : memref<36x640xbf16, #tpu.memory_space<vmem>>, vector<4x640xbf16>
    tpu.vector_store %arg5[%c20, %c0_7], %11 {strides = array<i32>} : memref<36x640xbf16, #tpu.memory_space<vmem>>, vector<4x640xbf16>,
    %13 = vector.extract_strided_slice %0 {offsets = [0, 36], sizes = [4, 640], strides = [1, 1]} : vector<4x768xbf16> to vector<4x640xbf16>
    %c24 = arith.constant 24 : index
    %c0_8 = arith.constant 0 : index
    %14 = vector.load %arg5[%c24, %c0_8] : memref<36x640xbf16, #tpu.memory_space<vmem>>, vector<4x640xbf16>
    tpu.vector_store %arg5[%c24, %c0_8], %13 {strides = array<i32>} : memref<36x640xbf16, #tpu.memory_space<vmem>>, vector<4x640xbf16>,
    %15 = vector.extract_strided_slice %0 {offsets = [0, 37], sizes = [4, 640], strides = [1, 1]} : vector<4x768xbf16> to vector<4x640xbf16>
    %c28 = arith.constant 28 : index
    %c0_9 = arith.constant 0 : index
    %16 = vector.load %arg5[%c28, %c0_9] : memref<36x640xbf16, #tpu.memory_space<vmem>>, vector<4x640xbf16>
    tpu.vector_store %arg5[%c28, %c0_9], %15 {strides = array<i32>} : memref<36x640xbf16, #tpu.memory_space<vmem>>, vector<4x640xbf16>,
    %17 = vector.extract_strided_slice %0 {offsets = [0, 38], sizes = [4, 640], strides = [1, 1]} : vector<4x768xbf16> to vector<4x640xbf16>
    %c32 = arith.constant 32 : index
    %c0_10 = arith.constant 0 : index
    %18 = vector.load %arg5[%c32, %c0_10] : memref<36x640xbf16, #tpu.memory_space<vmem>>, vector<4x640xbf16>
    tpu.vector_store %arg5[%c32, %c0_10], %17 {strides = array<i32>} : memref<36x640xbf16, #tpu.memory_space<vmem>>, vector<4x640xbf16>,
    %c0_11 = arith.constant 0 : index
    %c0_12 = arith.constant 0 : index
    %19 = vector.load %arg2[%c0_11, %c0_12] : memref<8x36xbf16, #tpu.memory_space<vmem>>, vector<8x36xbf16>
    %c0_13 = arith.constant 0 : index
    %c0_14 = arith.constant 0 : index
    %20 = vector.load %arg5[%c0_13, %c0_14] : memref<36x640xbf16, #tpu.memory_space<vmem>>, vector<36x640xbf16>
    %cst = arith.constant dense<0.000000e+00> : vector<8x640xf32>
    %21 = tpu.matmul %19, %20, %cst {dimension_numbers = #tpu.dot_dimension_numbers<[1], [0], [0], [1], [0, 0, 1, 1], [], []>} : vector<8x36xbf16>, vector<36x640xbf16>, vector<8x640xf32> -> vector<8x640xf32>
    %c0_15 = arith.constant 0 : index
    %c0_16 = arith.constant 0 : index
    %22 = vector.load %arg3[%c0_15, %c0_16] : memref<8x1xf32, #tpu.memory_space<vmem>>, vector<8x1xf32>
    %23 = vector.broadcast %22 : vector<8x1xf32> to vector<8x640xf32>
    %24 = arith.addf %21, %23 : vector<8x640xf32>
    %cst_17 = arith.constant 0.000000e+00 : f32
    %25 = vector.broadcast %cst_17 : f32 to vector<8x640xf32>
    %26 = arith.maximumf %24, %25 : vector<8x640xf32>
    %c0_18 = arith.constant 0 : index
    %c0_19 = arith.constant 0 : index
    %27 = vector.load %arg4[%c0_18, %c0_19] : memref<8x640xf32, #tpu.memory_space<vmem>>, vector<8x640xf32>
    tpu.vector_store %arg4[%c0_18, %c0_19], %26 {strides = array<i32>} : memref<8x640xf32, #tpu.memory_space<vmem>>, vector<8x640xf32>,
    return
  }
  func.func @transform_0(%arg0: i32) -> (i32, i32) {
    %c0_i32 = arith.constant 0 : i32
    %c0_i32_0 = arith.constant 0 : i32
    %c0_i32_1 = arith.constant 0 : i32
    return %c0_i32, %c0_i32_0 : i32, i32
  }
  func.func @transform_1(%arg0: i32) -> (i32, i32) {
    %c0_i32 = arith.constant 0 : i32
    %c0_i32_0 = arith.constant 0 : i32
    %c0_i32_1 = arith.constant 0 : i32
    return %c0_i32, %c0_i32_0 : i32, i32
  }
  func.func @transform_2(%arg0: i32) -> (i32, i32) {
    %c0_i32 = arith.constant 0 : i32
    %c0_i32_0 = arith.constant 0 : i32
    %c0_i32_1 = arith.constant 0 : i32
    return %c0_i32, %c0_i32_0 : i32, i32
  }
  func.func @transform_3(%arg0: i32) -> (i32, i32) {
    %c0_i32 = arith.constant 0 : i32
    %c0_i32_0 = arith.constant 0 : i32
    %c0_i32_1 = arith.constant 0 : i32
    return %c0_i32, %c0_i32_0 : i32, i32
  }
}

</mosaic_0001>

<bundles_post_ra>
// kernel: tpu_custom_call.1
= control target key start
LH: loop header
LB: loop body
LE: loop exit
PB: predicated region body
PF: predicated region fallthrough
CT: control target
= control target key end

     0   :  { %8 = vsyncpa [#allocation4], 0  ;;  %s773_s0 = inlined_call_operand.hbm [shape: bf16[4,768], index: 0, kind: input, shape index: {}]   ;;  %s774_s1 = inlined_call_operand.vmem [shape: bf16[8,36], index: 1, kind: input, shape index: {}]   ;;  %s775_s2 = inlined_call_operand.vmem [shape: f32[8,1], index: 2, kind: input, shape index: {}]   ;;  %s776_s3 = inlined_call_operand.hbm [shape: f32[8,640], index: 3, kind: output, shape index: {}]  }
   0x1   :  { %9 = vsyncpa [#allocation5], 0  ;;  %s612_s12 = smov [#allocation3]  }
   0x2   :  { %s16_s13 = sshll.u32 %s612_s12, 4  ;;  %s17_s13 = int_to_ptr.vmem [resolvable:$true] %s16_s13 }
   0x3   :  { %s576_s14 = scalar_lea.vmem %s17_s13, 192  ;;  %p581_p1 = scmp.lt.s32.totalorder %s17_s13, %s17_s13 }
   0x4   :  { %p577_p0 = scmp.ne.s32.totalorder %s17_s13, %s576_s14  ;;  %p582_p2 = scmp.lt.s32.totalorder %s576_s14, %s576_s14 }
   0x6   :  { %p583_p3 = por %p582_p2, %p581_p1 }
   0x8   :  { %p584_p4 = pnand %p583_p3, %p577_p0 }
   0xa   :  { %587 = shalt.err (!%p584_p4)
}
   0xb   :  { %19 = dma.hbm_to_vmem [thread:$0]  %s773_s0, 192, %s17_s13, [#allocation4]  }
   0xc   :  { %608 = dma.done.wait [#allocation4], 192  }
   0xd   :  { %609 = vsyncadd [#allocation4], 4294967104  ;;  %v36_v0 = vlaneseq  ;;  %v613_v1 = vmov 1983009808   ;;  %v28_v6 = vld [vmem:[#allocation3] sm:$0xff]  ;;  %s614_s17 = smov 109  }
   0xe   :  { %v34_v2 = vunpack.c.l.s4 %v613_v1  ;;  %v29_v7 = vld [vmem:[#allocation3 + $0x8] sm:$0xf]  ;;  %499 = vst.sshfl [vmem:[#allocation2] sm:$0xf pattern:$0x76325410] %v28_v6  ;;  %v32_v9 = vcombine.high %v28_v6, %v28_v6  ;;  %v60_v11 = vcombine.low %v28_v6, %v28_v6 }
   0xf   :  { %v37_v3 = vshrl.u32 %v36_v0, 7  ;;  %501 = vst.sshfl [vmem:[#allocation2 + $0x10] sm:$0x3 pattern:$0x76325410] %v29_v7  ;;  %s615_s18 = smov 90   ;;  %v68_v14 = vcombine.low %v29_v7, %v29_v7 }
  0x10   :  { %v35_v4 = vunpack.c.0.s8 %v34_v2  ;;  %500 = vst.sshfl [vmem:[#allocation2 + $0x8] sm:$0xf pattern:$0x76325410] %v32_v9  ;;  %s616_s0 = smov 108   ;;  %s617_s19 = smov 92  }
  0x11   :  { %s618_s20 = smov 91   ;;  %s619_s21 = smov 127   ;;  %v622_v16 = vmov 0   ;;  %v261_v17 = vld [vmem:[%s775_s2] sm:$0xff]  ;;  %vm85_vm0 = vcmask 1043456   ;;  %vm150_vm1 = vcmask 891904  }
  0x12   :  { %v38_v5 = vsub.s32 %v35_v4, %v37_v3  ;;  %s620_s22 = smov 126   ;;  %s621_s23 = smov 110   ;;  %384 = vmatprep.mubr.bf16.mxu0 %v622_v16  ;;  %425 = vmatprep.mubr.bf16.mxu1 %v622_v16  ;;  %vm234_vm2 = vcmask 736256   ;;  %vm192_vm3 = vcmask 752640   ;;  %vm171_vm4 = vcmask 883712  }
  0x13   :  { %550 = vset.pattern.permute.xlu0 %v622_v16  ;;  %vm213_vm5 = vcmask 744448   ;;  %vm87_vm6 = vcmask 1039360   ;;  %vm336_vm7 = vcmask 1041408   ;;  %vm108_vm8 = vcmask 1031168  }
  0x14   :  { %v39_v8 = vrot.slane %v28_v6, %v38_v5  ;;  %v46_v10 = vrot.slane %v32_v9, %v38_v5  ;;  %v67_v12 = vrot.slane %v60_v11, %v38_v5  ;;  %v53_v13 = vrot.slane %v29_v7, %v38_v5 }
  0x15   :  { %v75_v15 = vrot.slane %v68_v14, %v38_v5  ;;  %vm129_vm9 = vcmask 900096   ;;  %vm332_vm10 = vcmask 293888   ;;  %vm624_vm11 = vmmov 0  }
  0x16   :  { %140 = vrot.lane.b32.xlu1 %v39_v8, %s614_s17  ;;  %224 = vrot.lane.b32.xlu0 %v39_v8, %s615_s18 }
  0x1a   :  { %163 = vrot.lane.b32.xlu1 %v39_v8, %s616_s0  ;;  %182 = vrot.lane.b32.xlu0 %v39_v8, %s617_s19 }
  0x1e   :  { %142 = vrot.lane.b32.xlu1 %v46_v10, %s614_s17  ;;  %226 = vrot.lane.b32.xlu0 %v46_v10, %s615_s18 }
  0x22   :  { %184 = vrot.lane.b32.xlu1 %v46_v10, %s617_s19  ;;  %161 = vrot.lane.b32.xlu0 %v67_v12, %s616_s0 }
  0x26   :  { %205 = vrot.lane.b32.xlu1 %v39_v8, %s618_s20  ;;  %203 = vrot.lane.b32.xlu0 %v67_v12, %s618_s20 }
  0x2a   :  { %78 = vrot.lane.b32.xlu1 %v39_v8, %s619_s21  ;;  %76 = vrot.lane.b32.xlu0 %v67_v12, %s619_s21 }
  0x2e   :  { %100 = vrot.lane.b32.xlu1 %v46_v10, %s620_s22  ;;  %98 = vrot.lane.b32.xlu0 %v39_v8, %s620_s22 }
  0x32   :  { %121 = vrot.lane.b32.xlu1 %v39_v8, %s621_s23  ;;  %119 = vrot.lane.b32.xlu0 %v67_v12, %s621_s23 }
  0x36   :  { %144 = vrot.lane.b32.xlu1 %v53_v13, %s614_s17  ;;  %228 = vrot.lane.b32.xlu0 %v53_v13, %s615_s18 }
  0x3a   :  { %186 = vrot.lane.b32.xlu1 %v53_v13, %s617_s19  ;;  %165 = vrot.lane.b32.xlu0 %v75_v15, %s616_s0 }
  0x3e   :  { %80 = vrot.lane.b32.xlu1 %v75_v15, %s619_s21  ;;  %207 = vrot.lane.b32.xlu0 %v75_v15, %s618_s20 }
  0x42   :  { %123 = vrot.lane.b32.xlu1 %v75_v15, %s621_s23  ;;  %102 = vrot.lane.b32.xlu0 %v53_v13, %s620_s22 }
  0x46   :  { %264 = vperm.xlu0 %550, %v261_v17  }
  0x88   :  { %v141_v18 = vpop.permute.xlu1 %140  ;;  %v225_v19 = vpop.permute.xlu0 %224 }
  0x89   :  { %v146_v24 = vrot.slane %v141_v18, 4  ;;  %v230_v25 = vrot.slane %v225_v19, 4 }
  0x8c   :  { %v655_v20 = vpop.permute.xlu1 %163  ;;  %v183_v21 = vpop.permute.xlu0 %182 }
  0x8d   :  { %v168_v34 = vrot.slane %v655_v20, 4  ;;  %v188_v35 = vrot.slane %v183_v21, 4 }
  0x90   :  { %v657_v22 = vpop.permute.xlu1 %142  ;;  %v659_v23 = vpop.permute.xlu0 %226 }
  0x91   :  { %v147_v26 = vrot.slane %v657_v22, 4  ;;  %v231_v27 = vrot.slane %v659_v23, 4 }
  0x93   :  { %v149_v28 = vsel %vm85_vm0, %v146_v24, %v147_v26  ;;  %v233_v29 = vsel %vm85_vm0, %v230_v25, %v231_v27 }
  0x94   :  { %v151_v30 = vsel %vm150_vm1, %v141_v18, %v149_v28  ;;  %v235_v31 = vsel %vm234_vm2, %v225_v19, %v233_v29  ;;  %v671_v32 = vpop.permute.xlu1 %184  ;;  %v162_v33 = vpop.permute.xlu0 %161 }
  0x95   :  { %158 = vst [vmem:[#allocation2 + $0x28] sm:$0x33] %v151_v30  ;;  %242 = vst [vmem:[#allocation2 + $0x50] sm:$0x33] %v235_v31  ;;  %v189_v36 = vrot.slane %v671_v32, 4  ;;  %v167_v37 = vrot.slane %v162_v33, 4 }
  0x97   :  { %v191_v38 = vsel %vm85_vm0, %v188_v35, %v189_v36  ;;  %v170_v39 = vsel %vm85_vm0, %v167_v37, %v168_v34 }
  0x98   :  { %v193_v40 = vsel %vm192_vm3, %v183_v21, %v191_v38  ;;  %v172_v41 = vsel %vm171_vm4, %v162_v33, %v170_v39  ;;  %v683_v42 = vpop.permute.xlu1 %205  ;;  %v204_v43 = vpop.permute.xlu0 %203 }
  0x99   :  { %200 = vst [vmem:[#allocation2 + $0x3c] sm:$0x33] %v193_v40  ;;  %179 = vst [vmem:[#allocation2 + $0x28] sm:$0xcc] %v172_v41  ;;  %v210_v44 = vrot.slane %v683_v42, 4  ;;  %v209_v45 = vrot.slane %v204_v43, 4 }
  0x9b   :  { %v212_v46 = vsel %vm85_vm0, %v209_v45, %v210_v44 }
  0x9c   :  { %v214_v47 = vsel %vm213_vm5, %v204_v43, %v212_v46  ;;  %v690_v48 = vpop.permute.xlu1 %78  ;;  %v77_v49 = vpop.permute.xlu0 %76  ;;  %v258_v50 = vld [vmem:[#allocation2 + $0x50] sm:$0x33] }
  0x9d   :  { %221 = vst [vmem:[#allocation2 + $0x3c] sm:$0xcc] %v214_v47  ;;  %v83_v51 = vrot.slane %v690_v48, 4  ;;  %v82_v52 = vrot.slane %v77_v49, 4  ;;  %v513_v53 = vcombine.high %v258_v50, %v258_v50  ;;  %v512_v54 = vcombine.low %v258_v50, %v258_v50 }
  0x9f   :  { %v86_v55 = vsel %vm85_vm0, %v82_v52, %v83_v51  ;;  %517 = vmatprep.subr.msk.bf16.mxu0 %vm336_vm7, %v513_v53  ;;  %v338_v56 = vsel %vm336_vm7, %v512_v54, 0  ;;  %v623_v52 = vmov 0.0  }
  0xa0   :  { %v88_v57 = vsel %vm87_vm6, %v77_v49, %v86_v55  ;;  %v699_v58 = vpop.permute.xlu1 %100  ;;  %363 = vmatpush1.bf16.msra.mxu0 %v338_v56  ;;  %v99_v59 = vpop.permute.xlu0 %98  ;;  %v252_v2 = vld [vmem:[#allocation2 + $0x28] sm:$0xff] }
  0xa1   :  { %95 = vst [vmem:[#allocation2] sm:$0xcc] %v88_v57  ;;  %v105_v60 = vrot.slane %v699_v58, 4  ;;  %v104_v61 = vrot.slane %v99_v59, 4 }
  0xa3   :  { %v107_v62 = vsel %vm85_vm0, %v104_v61, %v105_v60 }
  0xa4   :  { %v109_v63 = vsel %vm108_vm8, %v99_v59, %v107_v62  ;;  %v706_v0 = vpop.permute.xlu1 %121  ;;  %v120_v1 = vpop.permute.xlu0 %119  ;;  %v255_v3 = vld [vmem:[#allocation2 + $0x3c] sm:$0xff] }
  0xa5   :  { %v553_v4 = vld [vmem:[#allocation2 + $0x2c] ss:$20 sps:$4 sm:$0xff]   ;;  %116 = vst [vmem:[#allocation2 + $0x14] sm:$0x33] %v109_v63  ;;  %v126_v5 = vrot.slane %v706_v0, 4  ;;  %v125_v6 = vrot.slane %v120_v1, 4  ;;  %v507_v7 = vcombine.low %v252_v2, %v255_v3 }
  0xa6   :  { %364 = vmatprep.subr.bf16.mxu0 %v553_v4 }
  0xa7   :  { %v128_v8 = vsel %vm85_vm0, %v125_v6, %v126_v5  ;;  %365 = vmatpush1.bf16.msra.mxu0 %v507_v7 }
  0xa8   :  { %v130_v9 = vsel %vm129_vm9, %v120_v1, %v128_v8  ;;  %v145_v10 = vpop.permute.xlu1 %144  ;;  %v229_v11 = vpop.permute.xlu0 %228  ;;  %v246_v35 = vld [vmem:[#allocation2] sm:$0xff] }
  0xa9   :  { %137 = vst [vmem:[#allocation2 + $0x14] sm:$0xcc] %v130_v9  ;;  %v148_v12 = vrot.slane %v145_v10, 4  ;;  %v232_v13 = vrot.slane %v229_v11, 4 }
  0xab   :  { %v152_v14 = vsel %vm85_vm0, %v147_v26, %v148_v12  ;;  %v154_v15 = vsel %vm150_vm1, %v145_v10, %v148_v12  ;;  %v236_v16 = vsel %vm85_vm0, %v231_v27, %v232_v13  ;;  %v238_v17 = vsel %vm234_vm2, %v229_v11, %v232_v13 }
  0xac   :  { %v153_v18 = vsel %vm150_vm1, %v657_v22, %v152_v14  ;;  %160 = vst [vmem:[#allocation2 + $0x38] sm:$0x3] %v154_v15  ;;  %v237_v19 = vsel %vm234_vm2, %v659_v23, %v236_v16  ;;  %244 = vst [vmem:[#allocation2 + $0x60] sm:$0x3] %v238_v17  ;;  %v187_v21 = vpop.permute.xlu1 %186  ;;  %v166_v24 = vpop.permute.xlu0 %165 }
  0xad   :  { %159 = vst [vmem:[#allocation2 + $0x30] sm:$0x33] %v153_v18  ;;  %243 = vst [vmem:[#allocation2 + $0x58] sm:$0x33] %v237_v19  ;;  %v190_v25 = vrot.slane %v187_v21, 4  ;;  %v169_v26 = vrot.slane %v166_v24, 4 }
  0xaf   :  { %v194_v27 = vsel %vm85_vm0, %v189_v36, %v190_v25  ;;  %v196_v28 = vsel %vm192_vm3, %v187_v21, %v190_v25  ;;  %v173_v22 = vsel %vm85_vm0, %v168_v34, %v169_v26  ;;  %v175_v29 = vsel %vm171_vm4, %v166_v24, %v169_v26 }
  0xb0   :  { %v195_v23 = vsel %vm192_vm3, %v671_v32, %v194_v27  ;;  %202 = vst [vmem:[#allocation2 + $0x4c] sm:$0x3] %v196_v28  ;;  %v174_v30 = vsel %vm171_vm4, %v655_v20, %v173_v22  ;;  %181 = vst [vmem:[#allocation2 + $0x38] sm:$0xc] %v175_v29  ;;  %v81_v31 = vpop.permute.xlu1 %80  ;;  %v208_v33 = vpop.permute.xlu0 %207  ;;  %v249_v36 = vld [vmem:[#allocation2 + $0x14] sm:$0xff] }
  0xb1   :  { %v555_v37 = vld [vmem:[#allocation2 + $0x4] ss:$20 sps:$4 sm:$0xff]   ;;  %201 = vst [vmem:[#allocation2 + $0x44] sm:$0x33] %v195_v23  ;;  %180 = vst [vmem:[#allocation2 + $0x30] sm:$0xcc] %v174_v30  ;;  %v502_v34 = vcombine.low %v246_v35, %v249_v36 }
  0xb2   :  { %v84_v38 = vrot.slane %v81_v31, 4  ;;  %v211_v39 = vrot.slane %v208_v33, 4  ;;  %366 = vmatprep.subr.bf16.mxu0 %v555_v37  ;;  %v245_v32 = vld [vmem:[%s774_s1] sm:$0xf]  ;;  %s625_s1 = smov [#allocation6]  }
  0xb3   :  { %367 = vmatpush1.bf16.msra.mxu0 %v502_v34  ;;  %v559_v45 = vld [vmem:[#allocation2 + $0x60] ss:$0 sps:$4 sm:$0x33]   ;;  %s490_s27 = sshll.u32 %s625_s1, 4  ;;  %s491_s27 = int_to_ptr.vmem [resolvable:$true] %s490_s27 }
  0xb4   :  { %v89_v20 = vsel %vm85_vm0, %v83_v51, %v84_v38  ;;  %v91_v40 = vsel %vm87_vm6, %v81_v31, %v84_v38  ;;  %v215_v41 = vsel %vm85_vm0, %v210_v44, %v211_v39  ;;  %v217_v43 = vsel %vm213_vm5, %v208_v33, %v211_v39  ;;  %v124_v49 = vpop.permute.xlu1 %123  ;;  %v103_v50 = vpop.permute.xlu0 %102  ;;  %v259_v51 = vld [vmem:[#allocation2 + $0x58] sm:$0x33]  ;;  %526 = vmatprep.subr.bf16.mxu0 %v623_v52  ;;  %s588_s28 = scalar_lea.vmem %s491_s27, 640  ;;  %p593_p6 = scmp.lt.s32.totalorder %s491_s27, %s491_s27 }
  0xb5   :  { %v90_v46 = vsel %vm87_vm6, %v690_v48, %v89_v20  ;;  %97 = vst [vmem:[#allocation2 + $0x10] sm:$0xc] %v91_v40  ;;  %v216_v47 = vsel %vm213_vm5, %v683_v42, %v215_v41  ;;  %223 = vst [vmem:[#allocation2 + $0x4c] sm:$0xc] %v217_v43  ;;  %v127_v44 = vrot.slane %v124_v49, 4  ;;  %v106_v53 = vrot.slane %v103_v50, 4  ;;  %p589_p5 = scmp.ne.s32.totalorder %s491_s27, %s588_s28  ;;  %p594_p7 = scmp.lt.s32.totalorder %s588_s28, %s588_s28 }
  0xb6   :  { %96 = vst [vmem:[#allocation2 + $0x8] sm:$0xcc] %v90_v46  ;;  %222 = vst [vmem:[#allocation2 + $0x44] sm:$0xcc] %v216_v47  ;;  %v515_v54 = vcombine.high %v259_v51, %v259_v51  ;;  %v514_v55 = vcombine.low %v259_v51, %v259_v51  ;;  %518 = vmatmul.mubr.msk.bf16.vlgmr.msra.gmra.mxu0 %vm332_vm10, %v245_v32  ;;  %v350_v48 = vsel %vm336_vm7, %v559_v45, 0 }
  0xb7   :  { %v131_v42 = vsel %vm85_vm0, %v126_v5, %v127_v44  ;;  %v133_v56 = vsel %vm129_vm9, %v124_v49, %v127_v44  ;;  %v110_v57 = vsel %vm85_vm0, %v105_v60, %v106_v53  ;;  %v112_v59 = vsel %vm108_vm8, %v103_v50, %v106_v53  ;;  %527 = vmatpush3.bf16.msra.mxu0 %v350_v48  ;;  %p595_p8 = por %p594_p7, %p593_p6 }
  0xb8   :  { %519 = vmatprep.subr.msk.bf16.mxu1 %vm336_vm7, %v515_v54  ;;  %v132_v61 = vsel %vm129_vm9, %v706_v0, %v131_v42  ;;  %139 = vst [vmem:[#allocation2 + $0x24] sm:$0xc] %v133_v56  ;;  %v111_v62 = vsel %vm108_vm8, %v699_v58, %v110_v57  ;;  %118 = vst [vmem:[#allocation2 + $0x24] sm:$0x3] %v112_v59  ;;  %v344_v63 = vsel %vm336_vm7, %v514_v55, 0  ;;  %532 = vmatprep.mubr.msk.bf16.mxu0 %vm624_vm11, %v623_v52 }
  0xb9   :  { %138 = vst [vmem:[#allocation2 + $0x1c] sm:$0xcc] %v132_v61  ;;  %117 = vst [vmem:[#allocation2 + $0x1c] sm:$0x33] %v111_v62  ;;  %404 = vmatpush1.bf16.msra.mxu1 %v344_v63  ;;  %528 = vmatprep.subr.bf16.mxu0 %v623_v52  ;;  %p596_p9 = pnand %p595_p8, %p589_p5 }
  0xbc   :  { %v560_v60 = vld [vmem:[#allocation2 + $0x38] ss:$20 sps:$4 sm:$0xff]  }
  0xbd   :  { %v561_v1 = vld [vmem:[#allocation2 + $0x34] ss:$20 sps:$4 sm:$0xff]   ;;  %v563_v2 = vld [vmem:[#allocation2 + $0x30] ss:$20 sps:$4 sm:$0xff]   ;;  %529 = vmatpush3.bf16.msra.mxu0 %v560_v60 }
  0xbe   :  { %405 = vmatprep.subr.bf16.mxu1 %v561_v1  ;;  %530 = vmatprep.subr.bf16.mxu0 %v623_v52 }
  0xbf   :  { %406 = vmatpush1.bf16.msra.mxu1 %v563_v2  ;;  %v564_v0 = vld [vmem:[#allocation2 + $0x10] ss:$20 sps:$4 sm:$0xff]  }
  0xc0   :  { %v565_v3 = vld [vmem:[#allocation2 + $0xc] ss:$20 sps:$4 sm:$0xff]   ;;  %v567_v58 = vld [vmem:[#allocation2 + $0x8] ss:$20 sps:$4 sm:$0xff]  }
  0xc1   :  { %531 = vmatpush3.bf16.msra.mxu0 %v564_v0  ;;  %407 = vmatprep.subr.bf16.mxu1 %v565_v3  ;;  %v265_v4 = vpop.permute.xlu0 %264 }
  0xc3   :  { %408 = vmatpush1.bf16.msra.mxu1 %v567_v58 }
  0xc4   :  { %533 = vmatmul.mubr.msk.bf16.vlgmr.msra.gmra.mxu0 %vm332_vm10, %v245_v32 }
  0xc6   :  { %520 = vmatmul.mubr.msk.bf16.vlgmr.msra.gmra.mxu1 %vm332_vm10, %v245_v32 }
 0x176   :  { %v386_v5 = vpop.f32.mrf.mxu0 }
 0x177   :  { %v387_v6 = vadd.f32 %v386_v5, %v265_v4 }
 0x178   :  { %v388_v7 = vpop.f32.mrf.mxu0 }
 0x179   :  { %v389_v8 = vadd.f32 %v388_v7, %v265_v4  ;;  %v474_v9 = vmax.f32 %v387_v6, 0.0 }
 0x17a   :  { %v390_v10 = vpop.f32.mrf.mxu0 }
 0x17b   :  { %v475_v11 = vmax.f32 %v389_v8, 0.0  ;;  %479 = vst [vmem:[#allocation6] sm:$0xff] %v474_v9 }
 0x17c   :  { %v391_v12 = vpop.f32.mrf.mxu0 }
 0x17d   :  { %480 = vst [vmem:[#allocation6 + $0x8] sm:$0xff] %v475_v11 }
 0x184   :  { %v468_v13 = vpop.f32.mrf.mxu0 }
 0x185   :  { %v469_v14 = vadd.f32 %v468_v13, %v265_v4 }
 0x186   :  { %v427_v15 = vpop.f32.mrf.mxu1  ;;  %v534_v16 = vpop.f32.mrf.mxu0 }
 0x187   :  { %v478_v17 = vmax.f32 %v469_v14, 0.0  ;;  %v428_v18 = vadd.f32 %v427_v15, %v265_v4 }
 0x188   :  { %v429_v19 = vpop.f32.mrf.mxu1  ;;  %v471_v21 = vpop.f32.mrf.mxu0 }
 0x189   :  { %483 = vst [vmem:[#allocation6 + $0x20] sm:$0xff] %v478_v17  ;;  %v476_v24 = vmax.f32 %v428_v18, 0.0  ;;  %v430_v25 = vadd.f32 %v429_v19, %v265_v4 }
 0x18a   :  { %v431_v26 = vpop.f32.mrf.mxu1  ;;  %v535_v27 = vpop.f32.mrf.mxu0 }
 0x18b   :  { %481 = vst [vmem:[#allocation6 + $0x10] sm:$0xff] %v476_v24  ;;  %v477_v28 = vmax.f32 %v430_v25, 0.0 }
 0x18c   :  { %v432_v22 = vpop.f32.mrf.mxu1 }
 0x18d   :  { %482 = vst [vmem:[#allocation6 + $0x18] sm:$0xff] %v477_v28 }
 0x18e   :  { %599 = shalt.err (!%p596_p9)
}
 0x18f   :  { %493 = dma.vmem_to_hbm [thread:$0]  %s491_s27, 640, %s776_s3, [#allocation5]  }
 0x190   :  { %610 = dma.done.wait [#allocation5], 640  }
 0x191   :  { %611 = vsyncadd [#allocation5], 4294966656 }
 0x192   :  { %497 = vsyncpa [#allocation4], 1 }
 0x193   :  { %498 = vsyncpa [#allocation5], 1 }

</bundles_post_ra>
